<compile_context>
chip_gen: v7x
topology: tpu7x:2x2x1
jax: 0.10.0
libtpu: 0.0.40
codegen_flags: <defaults>
</compile_context>

<pallas_src>
import jax
import jax.numpy as jnp
from jax.experimental import pallas as pl
from jax.experimental.pallas import tpu as pltpu


def _pos_emb_kernel(row_ref, o_ref):
    # row_ref: (1, LT)  lane-dense slice of the positional table
    # o_ref  : (TB, LT) output block = TB batch copies of that slice
    # Pure sublane broadcast + full-width lane-dense stores (HBM-writeback bound).
    o_ref[...] = jnp.broadcast_to(row_ref[...], o_ref.shape)


def _round_up(x, m):
    return ((x + m - 1) // m) * m


def _choose_tiles(batch_size, row_elems, itemsize, target_bytes=4 << 20):
    """Pick (batch_tile, lane_tile) for the flattened (B, S*D) output.

    * lane_tile: the full row when small, otherwise a multiple of 128 sized so
      one sublane-pack of rows stays under `target_bytes`.
    * batch_tile: a multiple of the dtype's sublane pack (8/f32, 16/bf16,
      32/int8) -- or the full batch when that is smaller -- so each block is
      <= target_bytes.
    * Ragged tails are handled by pl.cdiv + Pallas masking (no divisor search,
      no oversized fallback block).
    * Outputs > ~2 MiB are forced onto >= 2 grid steps (v7x 2-TC sharding).
    """
    pack = max(8, 32 // itemsize)          # sublane packing for this dtype
    row_bytes = row_elems * itemsize

    # --- lane tile -------------------------------------------------------
    if pack * row_bytes <= target_bytes or row_elems <= 128:
        lane_tile = row_elems              # full row (full-dim block is legal)
    else:
        lane_tile = (target_bytes // (pack * itemsize)) // 128 * 128
        lane_tile = max(128, min(lane_tile, (row_elems // 128) * 128))

    # --- batch tile --------------------------------------------------------
    block_row_bytes = lane_tile * itemsize
    tb = max(pack, (target_bytes // block_row_bytes) // pack * pack)
    if tb >= batch_size:
        tb = batch_size                    # full-dim block (any size is legal)

    # --- force >= 2 grid steps for large outputs (v7x megacore) -------------
    total_bytes = batch_size * row_bytes
    n_steps = pl.cdiv(batch_size, tb) * pl.cdiv(row_elems, lane_tile)
    if total_bytes > (2 << 20) and n_steps < 2:
        if batch_size > pack:
            tb = max(pack, _round_up(pl.cdiv(batch_size, 2), pack))
        elif lane_tile > 128:
            lane_tile = max(128, _round_up(pl.cdiv(row_elems, 2), 128))

    return tb, lane_tile


def positional_embedding(x, pe_weight):
    """x: (B, S) int array (only its shape is used). pe_weight: (max_len, d_model)."""
    batch_size, seq_len = x.shape
    max_len, d_model = pe_weight.shape
    assert seq_len <= max_len

    # Slice the table in the wrapper (no unused rows DMA'd) and flatten (S, D)
    # onto the lane axis so the kernel sees one lane-dense source row.
    row_elems = seq_len * d_model
    row = pe_weight[:seq_len].reshape(1, row_elems)
    itemsize = pe_weight.dtype.itemsize

    tb, lane_tile = _choose_tiles(batch_size, row_elems, itemsize)
    grid = (pl.cdiv(batch_size, tb), pl.cdiv(row_elems, lane_tile))

    out_flat = pl.pallas_call(
        _pos_emb_kernel,
        out_shape=jax.ShapeDtypeStruct((batch_size, row_elems), pe_weight.dtype),
        grid_spec=pltpu.PrefetchScalarGridSpec(
            num_scalar_prefetch=0,
            grid=grid,
            in_specs=[
                # Tiny (1, lane_tile) source slice; constant across the batch axis.
                pl.BlockSpec((1, lane_tile), lambda b, l: (0, l)),
            ],
            out_specs=pl.BlockSpec((tb, lane_tile), lambda b, l: (b, l)),
        ),
        compiler_params=pltpu.CompilerParams(
            # Every grid step is independent -> shard across v7x's 2 TCs.
            dimension_semantics=("parallel", "parallel"),
            # Explicit budget: 2x(<=4 MiB) output blocks + tiny input << 32 MiB,
            # valid on v5e (128 MiB phys), v6e (128 MiB), v7x (64 MiB).
            vmem_limit_bytes=32 << 20,
        ),
    )(row)

    return out_flat.reshape(batch_size, seq_len, d_model)


if __name__ == "__main__":
    # Module config (small, consistent with the forward pass):
    max_len = 16     # nn.Embedding(max_len, d_model)
    d_model = 32
    batch_size = 2
    seq_len = 8

    key = jax.random.PRNGKey(0)
    k_pe, k_x = jax.random.split(key)

    # nn.Embedding default init ~ N(0, 1); deterministic synthetic weights.
    pe_weight = jax.random.normal(k_pe, (max_len, d_model), dtype=jnp.float32)

    # x values are irrelevant to the output (only the shape matters), as in torch.
    x = jax.random.randint(k_x, (batch_size, seq_len), 0, max_len, dtype=jnp.int32)

    out = positional_embedding(x, pe_weight)
    out = jax.block_until_ready(out)

    # Reference: pe_weight[arange(seq_len)] broadcast over the batch.
    ref = jnp.broadcast_to(pe_weight[:seq_len][None], (batch_size, seq_len, d_model))
    assert out.shape == (batch_size, seq_len, d_model)
    assert jnp.allclose(out, ref), "mismatch vs reference"

    print("KERNEL_OK")
</pallas_src>

<mosaic_0001>
module attributes {stable_mosaic.version = 11 : i64} {
  func.func @_pos_emb_kernel(%arg0: i32, %arg1: i32, %arg2: memref<1x256xf32, #tpu.memory_space<vmem>>, %arg3: memref<2x256xf32, #tpu.memory_space<vmem>>) attributes {dimension_semantics = [#tpu.dimension_semantics<parallel>, #tpu.dimension_semantics<parallel>], iteration_bounds = array<i64: 1, 1>, scalar_prefetch = 0 : i64, scratch_operands = 0 : i64, tpu.core_type = #tpu.core_type<tc>, window_params = [{transform_indices = @transform_0, window_bounds = array<i64: 1, 256>}, {transform_indices = @transform_1, window_bounds = array<i64: 2, 256>}]} {
    %c0 = arith.constant 0 : index
    %c0_0 = arith.constant 0 : index
    %0 = vector.load %arg2[%c0, %c0_0] : memref<1x256xf32, #tpu.memory_space<vmem>>, vector<1x256xf32>
    %1 = vector.shape_cast %0 : vector<1x256xf32> to vector<1x256xf32>
    %2 = vector.broadcast %1 : vector<1x256xf32> to vector<2x256xf32>
    %c0_1 = arith.constant 0 : index
    %c0_2 = arith.constant 0 : index
    %3 = vector.load %arg3[%c0_1, %c0_2] : memref<2x256xf32, #tpu.memory_space<vmem>>, vector<2x256xf32>
    tpu.vector_store %arg3[%c0_1, %c0_2], %2 {strides = array<i32>} : memref<2x256xf32, #tpu.memory_space<vmem>>, vector<2x256xf32>,
    return
  }
  func.func @transform_0(%arg0: i32, %arg1: i32) -> (i32, i32) {
    %c0_i32 = arith.constant 0 : i32
    %c0_i32_0 = arith.constant 0 : i32
    return %c0_i32, %arg1 : i32, i32
  }
  func.func @transform_1(%arg0: i32, %arg1: i32) -> (i32, i32) {
    %c0_i32 = arith.constant 0 : i32
    return %arg0, %arg1 : i32, i32
  }
}

</mosaic_0001>

<bundles_post_ra>
// kernel: tpu_custom_call.1
= control target key start
LH: loop header
LB: loop body
LE: loop exit
PB: predicated region body
PF: predicated region fallthrough
CT: control target
= control target key end

     0   :  { %6 = vsyncpa [#allocation3], 0  ;;  %s143_s0 = inlined_call_operand.hbm [shape: f32[1,256], index: 0, kind: input, shape index: {}]   ;;  %s144_s1 = inlined_call_operand.hbm [shape: f32[2,256], index: 1, kind: output, shape index: {}]  }
   0x1   :  { %7 = vsyncpa [#allocation4], 0  ;;  %s107_s6 = smov [#allocation2]   ;;  %s59_s10 = scalar_lea.hbm %s143_s0, 32 }
   0x2   :  { %s14_s7 = sshll.u32 %s107_s6, 4  ;;  %p60_p0 = scmp.ne.s32.totalorder %s143_s0, %s59_s10  ;;  %s15_s7 = int_to_ptr.vmem [resolvable:$true] %s14_s7 }
   0x3   :  { %p63_p1 = scmp.lt.u32.totalorder %s59_s10, %s143_s0 }
   0x5   :  { %p65_p2 = pnand %p63_p1, %p60_p0 }
   0x7   :  { %68 = shalt.err (!%p65_p2)
}
   0x8   :  { %s69_s15 = scalar_lea.vmem %s15_s7, 32  ;;  %p74_p4 = scmp.lt.s32.totalorder %s15_s7, %s15_s7 }
   0x9   :  { %p70_p3 = scmp.ne.s32.totalorder %s15_s7, %s69_s15  ;;  %p75_p5 = scmp.lt.s32.totalorder %s69_s15, %s69_s15 }
   0xb   :  { %p76_p6 = por %p75_p5, %p74_p4 }
   0xd   :  { %p77_p7 = pnand %p76_p6, %p70_p3 }
   0xf   :  { %80 = shalt.err (!%p77_p7)
}
  0x10   :  { %17 = dma.hbm_to_vmem [thread:$0]  %s143_s0, 32, %s15_s7, [#allocation3]  }
  0x11   :  { %103 = dma.done.wait [#allocation3], 32  }
  0x12   :  { %104 = vsyncadd [#allocation3], 4294967264  ;;  %v23_v0 = vlaneseq  ;;  %v21_v4 = vld [vmem:[#allocation2] sm:$0x3]  ;;  %s108_s18 = smov [#allocation5]  }
  0x13   :  { %s47_s19 = sshll.u32 %s108_s18, 4  ;;  %s48_s19 = int_to_ptr.vmem [resolvable:$true] %s47_s19 }
  0x14   :  { %v24_v1 = vshrl.u32 %v23_v0, 7  ;;  %s81_s20 = scalar_lea.vmem %s48_s19, 64  ;;  %p86_p9 = scmp.lt.s32.totalorder %s48_s19, %s48_s19 }
  0x15   :  { %p82_p8 = scmp.ne.s32.totalorder %s48_s19, %s81_s20  ;;  %p87_p10 = scmp.lt.s32.totalorder %s81_s20, %s81_s20 }
  0x16   :  { %v25_v2 = vsub.s32 0, %v24_v1  ;;  %v29_v3 = vsub.s32 1, %v24_v1 }
  0x17   :  { %p88_p11 = por %p87_p10, %p86_p9 }
  0x18   :  { %v26_v5 = vrot.slane %v21_v4, %v25_v2  ;;  %v30_v6 = vrot.slane %v21_v4, %v29_v3 }
  0x19   :  { %p89_p12 = pnand %p88_p11, %p82_p8 }
  0x1a   :  { %v31_v7 = vcombine.low %v26_v5, %v30_v6 }
  0x1c   :  { %56 = vst.sshfl [vmem:[#allocation5] sm:$0x33 pattern:$0x76325410] %v31_v7 }
  0x1d   :  { %92 = shalt.err (!%p89_p12)
}
  0x1e   :  { %s93_s22 = scalar_lea.hbm %s144_s1, 64 }
  0x1f   :  { %p94_p13 = scmp.ne.s32.totalorder %s144_s1, %s93_s22  ;;  %p97_p0 = scmp.lt.u32.totalorder %s93_s22, %s144_s1 }
  0x21   :  { %p99_p1 = pnand %p97_p0, %p94_p13 }
  0x23   :  { %102 = shalt.err (!%p99_p1)
}
  0x24   :  { %50 = dma.vmem_to_hbm [thread:$0]  %s48_s19, 64, %s144_s1, [#allocation4]  }
  0x25   :  { %105 = dma.done.wait [#allocation4], 64  }
  0x26   :  { %106 = vsyncadd [#allocation4], 4294967232 }
  0x27   :  { %54 = vsyncpa [#allocation3], 1 }
  0x28   :  { %55 = vsyncpa [#allocation4], 1 }

</bundles_post_ra>
